<compile_context>
chip_gen: v5e
topology: v5e:2x2
jax: 0.10.0
libtpu: 0.0.40
codegen_flags: <defaults>
</compile_context>

<pallas_src>
import functools
import math

import jax
import jax.numpy as jnp
from jax.experimental import pallas as pl
from jax.experimental.pallas import tpu as pltpu

# Module constants (PyTorch __init__ defaults).
DA = 0.00025
DS = 0.0005
MU = 0.065
RHO = 0.04
N_GRID = 63
H_STEP = 1.0 / (N_GRID - 1)
# Laplacian scale 1/h^2 folded into the diffusion coefficients at trace time.
DA_C = DA / (H_STEP * H_STEP)
DS_C = DS / (H_STEP * H_STEP)


def _grayscott_kernel(coef_ref, x_ref, out_ref, *, H, W_pad):
    """One batch tile.

    coef_ref: (8, 2*H*W_pad) f32 fused per-lane coefficients:
        row 0: c_diff*n_valid + c_lin   (c_diff = DA/h^2 on A lanes, DS/h^2 on S)
        row 1: c_diff*m_up              (m_* = 1 where that neighbour exists,
        row 2: c_diff*m_down             0 on replicate edges and pad lanes)
        row 3: c_diff*m_left
        row 4: c_diff*m_right
        row 5: 1 on A lanes, 0 on S lanes
        row 6: -1 on A lanes, +1 on S lanes   (sign of the S*A^2 term)
        row 7:  0 on A lanes, -rho on S lanes (constant term)
    x_ref:   (TB, 2*H*W_pad) f32 -- per batch row: [A plane | S plane].
    out_ref: (TB, 2*H*W_pad) f32 -- [F_A plane | F_S plane] per batch row.
    """
    hw = H * W_pad
    lanes = 2 * hw

    x = x_ref[...]
    coef = coef_ref[...]
    r_c = coef[0:1, :]
    r_up = coef[1:2, :]
    r_dn = coef[2:3, :]
    r_lf = coef[3:4, :]
    r_rt = coef[4:5, :]
    c_isa = coef[5:6, :]
    c_sgn = coef[6:7, :]
    c_cst = coef[7:8, :]

    # Shifted neighbours via lane rotation (jnp.roll semantics:
    # roll(x, s)[q] = x[(q - s) mod lanes]).  Edge/pad masks folded into the
    # coefficient rows zero out wrapped / cross-plane / pad-column values,
    # implementing replicate padding.
    up = pltpu.roll(x, shift=W_pad, axis=1)            # x[q - W_pad]
    down = pltpu.roll(x, shift=lanes - W_pad, axis=1)  # x[q + W_pad]
    left = pltpu.roll(x, shift=1, axis=1)              # x[q - 1]
    right = pltpu.roll(x, shift=lanes - 1, axis=1)     # x[q + 1]
    # Channel partner: S at A lanes, A at S lanes (roll by half the axis
    # length is its own inverse, so one rotation serves both halves).
    partner = pltpu.roll(x, shift=hw, axis=1)

    a_val = partner + c_isa * (x - partner)            # A at every lane
    s_val = x + partner - a_val                        # S at every lane
    sa2 = s_val * a_val * a_val                        # S * A^2

    out_ref[...] = (r_c * x - r_up * up - r_dn * down - r_lf * left
                    - r_rt * right + c_sgn * sa2 + c_cst)


def _coefficients(H, W, W_pad):
    """(8, 2*H*W_pad) f32 fused per-lane coefficient rows (see kernel doc)."""
    f32 = jnp.float32
    hw_pad = H * W_pad
    ij = jnp.arange(hw_pad, dtype=jnp.int32)
    ri = ij // W_pad
    cj = ij - ri * W_pad
    valid = cj < W                      # pad columns get all-zero masks
    m_up = ((ri > 0) & valid).astype(f32)
    m_down = ((ri < H - 1) & valid).astype(f32)
    m_left = ((cj > 0) & valid).astype(f32)
    m_right = ((cj < W - 1) & valid).astype(f32)
    center = m_up + m_down + m_left + m_right

    def both(p):                        # per-plane row -> [A plane | S plane]
        return jnp.concatenate([p, p])

    is_a = jnp.concatenate(
        [jnp.ones((hw_pad,), f32), jnp.zeros((hw_pad,), f32)])
    c_diff = jnp.where(is_a > 0.5, DA_C, DS_C).astype(f32)
    c_sign = jnp.where(is_a > 0.5, -1.0, 1.0).astype(f32)
    c_lin = jnp.where(is_a > 0.5, MU + RHO, RHO).astype(f32)
    c_const = jnp.where(is_a > 0.5, 0.0, -RHO).astype(f32)

    r_c = c_diff * both(center) + c_lin
    r_up = c_diff * both(m_up)
    r_down = c_diff * both(m_down)
    r_left = c_diff * both(m_left)
    r_right = c_diff * both(m_right)
    return jnp.stack(
        [r_c, r_up, r_down, r_left, r_right, is_a, c_sign, c_const])


def _pick_batch_tile(batch, lanes, itemsize, vmem_budget=24 * 1024 * 1024):
    """Batch tile (multiple of 8, f32 sublane packing) whose double-buffered
    in+out footprint fits a ~24 MiB budget, capped so the grid keeps >= 2
    steps when the batch allows (dual-TensorCore sharding on v7x)."""
    b8 = -(-batch // 8) * 8
    per_row = 2 * 2 * lanes * itemsize          # 2 buffers x (in + out)
    tb = max(8, (vmem_budget // per_row) // 8 * 8)
    tb = min(tb, b8)
    if b8 >= 16 and tb > b8 // 2:
        tb = max(8, (b8 // 2) // 8 * 8)
    return tb


@jax.jit
def grayscott_forward(a_s):
    """Pallas TPU forward pass. Returns (cat([F_A, F_S], dim=1), A_S)."""
    B, C, H, W = a_s.shape
    assert C == 2, "A_S must have exactly two channels (A, S)"
    x = a_s.astype(jnp.float32)
    itemsize = 4

    # Pad W so the lane axis (2*H*W_pad) is a multiple of 128 (dense vregs,
    # unmasked stores).  Smallest such W_pad >= W.
    d = 64 // math.gcd(H, 64)
    W_pad = -(-W // d) * d
    lanes = 2 * H * W_pad

    tb = _pick_batch_tile(B, lanes, itemsize)
    Bp = -(-B // tb) * tb

    if W_pad != W:
        x = jnp.pad(x, ((0, 0), (0, 0), (0, 0), (0, W_pad - W)))
    x2 = x.reshape(B, lanes)                     # [A plane | S plane]
    if Bp != B:
        x2 = jnp.pad(x2, ((0, Bp - B), (0, 0)))

    coef = _coefficients(H, W, W_pad)
    kernel = functools.partial(_grayscott_kernel, H=H, W_pad=W_pad)

    out2 = pl.pallas_call(
        kernel,
        out_shape=jax.ShapeDtypeStruct((Bp, lanes), jnp.float32),
        grid=(Bp // tb,),
        in_specs=[
            pl.BlockSpec((8, lanes), lambda i: (0, 0)),    # fused coefficients
            pl.BlockSpec((tb, lanes), lambda i: (i, 0)),   # state tile
        ],
        out_specs=pl.BlockSpec((tb, lanes), lambda i: (i, 0)),
        compiler_params=pltpu.CompilerParams(
            dimension_semantics=("parallel",),
            vmem_limit_bytes=40 * 1024 * 1024,
        ),
        cost_estimate=pl.CostEstimate(
            flops=20 * Bp * lanes,
            transcendentals=0,
            bytes_accessed=(2 * Bp * lanes + 8 * lanes) * itemsize,
        ),
    )(coef, x2)

    out = out2[:B].reshape(B, 2, H, W_pad)
    if W_pad != W:
        out = out[:, :, :, :W]
    return out.astype(a_s.dtype), a_s


def _reference(a_s):
    """Pure-JAX reference (replicate-padded conv written with concatenates)."""
    A = a_s[:, 0, :, :]
    S = a_s[:, 1, :, :]

    def lap(x):
        up = jnp.concatenate([x[:, :1, :], x[:, :-1, :]], axis=1)
        down = jnp.concatenate([x[:, 1:, :], x[:, -1:, :]], axis=1)
        left = jnp.concatenate([x[:, :, :1], x[:, :, :-1]], axis=2)
        right = jnp.concatenate([x[:, :, 1:], x[:, :, -1:]], axis=2)
        return (4.0 * x - up - down - left - right) / (H_STEP * H_STEP)

    sa2 = S * A * A
    f_a = DA * lap(A) - sa2 + (MU + RHO) * A
    f_s = DS * lap(S) + sa2 - RHO * (1.0 - S)
    return jnp.stack([f_a, f_s], axis=1)


if __name__ == "__main__":
    key = jax.random.PRNGKey(0)

    # Small shapes; the second/third exercise lane padding (W=63 -> 64, the
    # production grid) and the multi-step parallel batch grid.
    shapes = [(2, 2, 16, 16), (2, 2, 63, 63), (16, 2, 16, 16)]
    for shp in shapes:
        key, sub = jax.random.split(key)
        a_s = jax.random.uniform(sub, shp, dtype=jnp.float32)

        out, passthrough = grayscott_forward(a_s)
        jax.block_until_ready(out)

        ref = _reference(a_s)
        assert out.shape == a_s.shape, (out.shape, shp)
        assert passthrough.shape == a_s.shape
        assert jnp.allclose(out, ref, rtol=1e-5, atol=1e-5), (
            f"mismatch vs reference for shape {shp}")
        assert jnp.array_equal(passthrough, a_s)

    print("KERNEL_OK")
</pallas_src>

<mosaic_0001>
module attributes {stable_mosaic.version = 11 : i64} {
  func.func @_grayscott_kernel(%arg0: i32, %arg1: memref<8x512xf32, #tpu.memory_space<vmem>>, %arg2: memref<8x512xf32, #tpu.memory_space<vmem>>, %arg3: memref<8x512xf32, #tpu.memory_space<vmem>>) attributes {dimension_semantics = [#tpu.dimension_semantics<parallel>], iteration_bounds = array<i64: 1>, scalar_prefetch = 0 : i64, scratch_operands = 0 : i64, tpu.core_type = #tpu.core_type<tc>, window_params = [{pipeline_mode = #tpu.pipeline_mode<synchronous>, transform_indices = @transform_0, window_bounds = array<i64: 8, 512>}, {transform_indices = @transform_1, window_bounds = array<i64: 8, 512>}, {transform_indices = @transform_2, window_bounds = array<i64: 8, 512>}]} {
    %c0 = arith.constant 0 : index
    %c0_0 = arith.constant 0 : index
    %0 = vector.load %arg2[%c0, %c0_0] : memref<8x512xf32, #tpu.memory_space<vmem>>, vector<8x512xf32>
    %c0_1 = arith.constant 0 : index
    %c0_2 = arith.constant 0 : index
    %1 = vector.load %arg1[%c0_1, %c0_2] : memref<8x512xf32, #tpu.memory_space<vmem>>, vector<8x512xf32>
    %2 = vector.extract_strided_slice %1 {offsets = [0, 0], sizes = [1, 512], strides = [1, 1]} : vector<8x512xf32> to vector<1x512xf32>
    %3 = vector.extract_strided_slice %1 {offsets = [1, 0], sizes = [1, 512], strides = [1, 1]} : vector<8x512xf32> to vector<1x512xf32>
    %4 = vector.extract_strided_slice %1 {offsets = [2, 0], sizes = [1, 512], strides = [1, 1]} : vector<8x512xf32> to vector<1x512xf32>
    %5 = vector.extract_strided_slice %1 {offsets = [3, 0], sizes = [1, 512], strides = [1, 1]} : vector<8x512xf32> to vector<1x512xf32>
    %6 = vector.extract_strided_slice %1 {offsets = [4, 0], sizes = [1, 512], strides = [1, 1]} : vector<8x512xf32> to vector<1x512xf32>
    %7 = vector.extract_strided_slice %1 {offsets = [5, 0], sizes = [1, 512], strides = [1, 1]} : vector<8x512xf32> to vector<1x512xf32>
    %8 = vector.extract_strided_slice %1 {offsets = [6, 0], sizes = [1, 512], strides = [1, 1]} : vector<8x512xf32> to vector<1x512xf32>
    %9 = vector.extract_strided_slice %1 {offsets = [7, 0], sizes = [1, 512], strides = [1, 1]} : vector<8x512xf32> to vector<1x512xf32>
    %c16_i32 = arith.constant 16 : i32
    %10 = tpu.dynamic_rotate %0 by %c16_i32 dim 1 : vector<8x512xf32>, i32 -> vector<8x512xf32>
    %c496_i32 = arith.constant 496 : i32
    %11 = tpu.dynamic_rotate %0 by %c496_i32 dim 1 : vector<8x512xf32>, i32 -> vector<8x512xf32>
    %c1_i32 = arith.constant 1 : i32
    %12 = tpu.dynamic_rotate %0 by %c1_i32 dim 1 : vector<8x512xf32>, i32 -> vector<8x512xf32>
    %c511_i32 = arith.constant 511 : i32
    %13 = tpu.dynamic_rotate %0 by %c511_i32 dim 1 : vector<8x512xf32>, i32 -> vector<8x512xf32>
    %c256_i32 = arith.constant 256 : i32
    %14 = tpu.dynamic_rotate %0 by %c256_i32 dim 1 : vector<8x512xf32>, i32 -> vector<8x512xf32>
    %15 = arith.subf %0, %14 : vector<8x512xf32>
    %16 = vector.broadcast %7 : vector<1x512xf32> to vector<8x512xf32>
    %17 = arith.mulf %16, %15 : vector<8x512xf32>
    %18 = arith.addf %14, %17 : vector<8x512xf32>
    %19 = arith.addf %0, %14 : vector<8x512xf32>
    %20 = arith.subf %19, %18 : vector<8x512xf32>
    %21 = arith.mulf %20, %18 : vector<8x512xf32>
    %22 = arith.mulf %21, %18 : vector<8x512xf32>
    %23 = vector.broadcast %2 : vector<1x512xf32> to vector<8x512xf32>
    %24 = arith.mulf %23, %0 : vector<8x512xf32>
    %25 = vector.broadcast %3 : vector<1x512xf32> to vector<8x512xf32>
    %26 = arith.mulf %25, %10 : vector<8x512xf32>
    %27 = arith.subf %24, %26 : vector<8x512xf32>
    %28 = vector.broadcast %4 : vector<1x512xf32> to vector<8x512xf32>
    %29 = arith.mulf %28, %11 : vector<8x512xf32>
    %30 = arith.subf %27, %29 : vector<8x512xf32>
    %31 = vector.broadcast %5 : vector<1x512xf32> to vector<8x512xf32>
    %32 = arith.mulf %31, %12 : vector<8x512xf32>
    %33 = arith.subf %30, %32 : vector<8x512xf32>
    %34 = vector.broadcast %6 : vector<1x512xf32> to vector<8x512xf32>
    %35 = arith.mulf %34, %13 : vector<8x512xf32>
    %36 = arith.subf %33, %35 : vector<8x512xf32>
    %37 = vector.broadcast %8 : vector<1x512xf32> to vector<8x512xf32>
    %38 = arith.mulf %37, %22 : vector<8x512xf32>
    %39 = arith.addf %36, %38 : vector<8x512xf32>
    %40 = vector.broadcast %9 : vector<1x512xf32> to vector<8x512xf32>
    %41 = arith.addf %39, %40 : vector<8x512xf32>
    %c0_3 = arith.constant 0 : index
    %c0_4 = arith.constant 0 : index
    %42 = vector.load %arg3[%c0_3, %c0_4] : memref<8x512xf32, #tpu.memory_space<vmem>>, vector<8x512xf32>
    tpu.vector_store %arg3[%c0_3, %c0_4], %41 {strides = array<i32>} : memref<8x512xf32, #tpu.memory_space<vmem>>, vector<8x512xf32>,
    return
  }
  func.func @transform_0(%arg0: i32) -> (i32, i32) {
    %c0_i32 = arith.constant 0 : i32
    %c0_i32_0 = arith.constant 0 : i32
    %c0_i32_1 = arith.constant 0 : i32
    return %c0_i32, %c0_i32_0 : i32, i32
  }
  func.func @transform_1(%arg0: i32) -> (i32, i32) {
    %c0_i32 = arith.constant 0 : i32
    %c0_i32_0 = arith.constant 0 : i32
    return %arg0, %c0_i32 : i32, i32
  }
  func.func @transform_2(%arg0: i32) -> (i32, i32) {
    %c0_i32 = arith.constant 0 : i32
    %c0_i32_0 = arith.constant 0 : i32
    return %arg0, %c0_i32 : i32, i32
  }
}

</mosaic_0001>

<bundles_post_ra>
// kernel: grayscott_forward.1
= control target key start
LH: loop header
LB: loop body
LE: loop exit
PB: predicated region body
PF: predicated region fallthrough
CT: control target
= control target key end

     0   :  { %s191_s13 = smov 16   ;;  %s192_s14 = smov 112   ;;  %v27_v14 = vlaneseq  ;;  %s410_s1 = inlined_call_operand.vmem [shape: f32[8,512], index: 1, kind: input, shape index: {}]   ;;  %s411_s0 = inlined_call_operand.vmem [shape: f32[8,512], index: 0, kind: input, shape index: {}]   ;;  %s412_s2 = inlined_call_operand.vmem [shape: f32[8,512], index: 2, kind: output, shape index: {}]  }
   0x1   :  { %v213_v0 = vld [vmem:[%s410_s1 + $0x10] sm:$0xff]  ;;  %v218_v1 = vld [vmem:[%s410_s1] sm:$0xff]  ;;  %v226_v2 = vld [vmem:[%s410_s1 + $0x18] sm:$0xff]  ;;  %s193_s19 = smov 1  }
   0x2   :  { %23 = vrot.lane.b32.xlu1 %v213_v0, %s191_s13  ;;  %19 = vrot.lane.b32.xlu0 %v218_v1, %s191_s13  ;;  %v231_v3 = vld [vmem:[%s410_s1 + $0x8] sm:$0xff]  ;;  %s194_s1 = smov 127   ;;  %v255_v8 = vld [vmem:[%s411_s0] sm:$0xff]  ;;  %v73_v12 = vsub.f32 %v218_v1, %v213_v0  ;;  %v272_v19 = vand.u32 127, %v27_v14  ;;  %v287_v25 = vadd.f32 %v213_v0, %v218_v1  ;;  %v75_v28 = vsub.f32 %v213_v0, %v218_v1 }
   0x3   :  { %34 = vrot.lane.b32.xlu2 %v218_v1, %s192_s14  ;;  %v260_v9 = vld [vmem:[%s411_s0 + $0x8] sm:$0xff]  ;;  %v74_v10 = vsub.f32 %v231_v3, %v226_v2  ;;  %v77_v13 = vperm.slane %v255_v8, 5  ;;  %v277_v21 = vld [vmem:[%s411_s0 + $0x18] sm:$0xff]  ;;  %v281_v22 = vadd.f32 %v226_v2, %v231_v3  ;;  %v292_v26 = vld [vmem:[%s411_s0 + $0x10] sm:$0xff]  ;;  %v103_v27 = vperm.slane %v255_v8, 0 }
   0x4   :  { %v78_v11 = vperm.slane %v260_v9, 5  ;;  %vm29_vm0 = vcmp.lt.s32.totalorder %v272_v19, 16  ;;  %v79_v29 = vperm.slane %v292_v26, 5  ;;  %v106_v30 = vperm.slane %v277_v21, 0 }
   0x5   :  { %v81_v18 = vmul.f32 %v77_v13, %v73_v12  ;;  %v104_v31 = vperm.slane %v260_v9, 0  ;;  %v76_v34 = vsub.f32 %v226_v2, %v231_v3  ;;  %v80_v35 = vperm.slane %v277_v21, 5 }
   0x6   :  { %v82_v17 = vmul.f32 %v78_v11, %v74_v10  ;;  %vm42_vm1 = vcmp.lt.s32.totalorder %v272_v19, 112  ;;  %v105_v36 = vperm.slane %v292_v26, 0  ;;  %v123_v39 = vperm.slane %v255_v8, 2 }
   0x7   :  { %v85_v24 = vadd.f32 %v81_v18, %v213_v0  ;;  %v111_v40 = vperm.slane %v255_v8, 1  ;;  %v114_v41 = vperm.slane %v277_v21, 1  ;;  %v112_v42 = vperm.slane %v260_v9, 1 }
   0x8   :  { %v86_v23 = vadd.f32 %v82_v17, %v226_v2  ;;  %v107_v44 = vmul.f32 %v103_v27, %v218_v1  ;;  %v113_v45 = vperm.slane %v292_v26, 1  ;;  %v83_v46 = vmul.f32 %v79_v29, %v75_v28 }
   0x9   :  { %v91_v38 = vsub.f32 %v287_v25, %v85_v24  ;;  %v326_v48 = vmul.f32 %v106_v30, %v226_v2  ;;  %v108_v49 = vmul.f32 %v104_v31, %v231_v3  ;;  %v84_v50 = vmul.f32 %v80_v35, %v76_v34 }
   0xa   :  { %25 = vrot.lane.b32.xlu1 %v226_v2, %s191_s13  ;;  %21 = vrot.lane.b32.xlu0 %v231_v3, %s191_s13  ;;  %v92_v37 = vsub.f32 %v281_v22, %v86_v23  ;;  %v330_v51 = vmul.f32 %v105_v36, %v213_v0  ;;  %vm55_vm2 = vcmp.lt.s32.totalorder %v272_v19, 1  ;;  %v135_v56 = vperm.slane %v255_v8, 3 }
   0xb   :  { %36 = vrot.lane.b32.xlu2 %v231_v3, %s192_s14  ;;  %v95_v53 = vmul.f32 %v91_v38, %v85_v24  ;;  %v126_v57 = vperm.slane %v277_v21, 2  ;;  %v124_v58 = vperm.slane %v260_v9, 2  ;;  %v125_v61 = vperm.slane %v292_v26, 2 }
   0xc   :  { %v96_v52 = vmul.f32 %v92_v37, %v86_v23  ;;  %v87_v62 = vadd.f32 %v83_v46, %v218_v1  ;;  %v136_v10 = vperm.slane %v260_v9, 3  ;;  %v160_v11 = vperm.slane %v260_v9, 6 }
   0xd   :  { %v88_v12 = vadd.f32 %v84_v50, %v231_v3  ;;  %v99_v14 = vmul.f32 %v95_v53, %v85_v24  ;;  %v159_v17 = vperm.slane %v255_v8, 6  ;;  %v137_v28 = vperm.slane %v292_v26, 3 }
   0xe   :  { %vm68_vm3 = vcmp.lt.s32.totalorder %v272_v19, 127  ;;  %v147_v35 = vperm.slane %v255_v8, 4  ;;  %v150_v50 = vperm.slane %v277_v21, 4  ;;  %v174_v19 = vperm.slane %v277_v21, 7 }
   0xf   :  { %v94_v31 = vsub.f32 %v281_v22, %v88_v12  ;;  %v163_v36 = vmul.f32 %v159_v17, %v99_v14  ;;  %v162_v14 = vperm.slane %v277_v21, 6 }
  0x11   :  { %v98_v22 = vmul.f32 %v94_v31, %v88_v12 }
  0x12   :  { %40 = vrot.lane.b32.xlu1 %v226_v2, %s192_s14  ;;  %38 = vrot.lane.b32.xlu0 %v213_v0, %s192_s14 }
  0x13   :  { %47 = vrot.lane.b32.xlu2 %v218_v1, %s193_s19 }
  0x1a   :  { %51 = vrot.lane.b32.xlu1 %v213_v0, %s193_s19  ;;  %49 = vrot.lane.b32.xlu0 %v231_v3, %s193_s19 }
  0x1b   :  { %53 = vrot.lane.b32.xlu2 %v226_v2, %s193_s19 }
  0x22   :  { %62 = vrot.lane.b32.xlu1 %v231_v3, %s194_s1  ;;  %60 = vrot.lane.b32.xlu0 %v218_v1, %s194_s1  ;;  %v148_v3 = vperm.slane %v260_v9, 4 }
  0x23   :  { %64 = vrot.lane.b32.xlu2 %v213_v0, %s194_s1  ;;  %v138_v0 = vperm.slane %v277_v21, 3 }
  0x2a   :  { %66 = vrot.lane.b32.xlu0 %v226_v2, %s194_s1 }
  0x5d   :  { %v246_v4 = vpop.permute.xlu2 %34 }
  0x65   :  { %v250_v7 = vpop.permute.xlu2 %36 }
  0x66   :  { %v45_v47 = vsel %vm42_vm1, %v246_v4, %v250_v7 }
  0x67   :  { %v127_v59 = vmul.f32 %v123_v39, %v45_v47  ;;  %v149_v47 = vperm.slane %v292_v26, 4 }
  0x6d   :  { %v48_v20 = vpop.permute.xlu2 %47 }
  0x74   :  { %v248_v5 = vpop.permute.xlu1 %23  ;;  %v20_v6 = vpop.permute.xlu0 %19 }
  0x75   :  { %v54_v55 = vpop.permute.xlu2 %53 }
  0x76   :  { %v59_v27 = vsel %vm55_vm2, %v54_v55, %v48_v20 }
  0x7c   :  { %v268_v15 = vpop.permute.xlu1 %25  ;;  %v270_v16 = vpop.permute.xlu0 %21 }
  0x7d   :  { %v33_v43 = vsel %vm29_vm0, %v268_v15, %v20_v6  ;;  %v32_v60 = vsel %vm29_vm0, %v20_v6, %v270_v16  ;;  %v100_v6 = vmul.f32 %v96_v52, %v86_v23  ;;  %v30_v23 = vsel %vm29_vm0, %v248_v5, %v268_v15  ;;  %v65_v39 = vpop.permute.xlu2 %64 }
  0x7e   :  { %v115_v54 = vmul.f32 %v111_v40, %v33_v43  ;;  %v116_v18 = vmul.f32 %v112_v42, %v32_v60  ;;  %v31_v24 = vsel %vm29_vm0, %v270_v16, %v248_v5  ;;  %v172_v40 = vperm.slane %v260_v9, 7 }
  0x7f   :  { %v164_v34 = vmul.f32 %v160_v11, %v100_v6  ;;  %v118_v15 = vmul.f32 %v114_v41, %v30_v23  ;;  %v117_v42 = vmul.f32 %v113_v45, %v31_v24  ;;  %v171_v43 = vperm.slane %v255_v8, 7 }
  0x80   :  { %v119_v1 = vsub.f32 %v107_v44, %v115_v54  ;;  %v120_v37 = vsub.f32 %v108_v49, %v116_v18  ;;  %v161_v6 = vperm.slane %v292_v26, 6  ;;  %v173_v24 = vperm.slane %v292_v26, 7 }
  0x84   :  { %v301_v32 = vpop.permute.xlu1 %40  ;;  %v303_v33 = vpop.permute.xlu0 %38 }
  0x85   :  { %v44_v13 = vsel %vm42_vm1, %v250_v7, %v303_v33  ;;  %v93_v7 = vsub.f32 %v287_v25, %v87_v62  ;;  %v131_v25 = vsub.f32 %v119_v1, %v127_v59  ;;  %v46_v49 = vsel %vm42_vm1, %v301_v32, %v246_v4 }
  0x86   :  { %v128_v30 = vmul.f32 %v124_v58, %v44_v13  ;;  %v43_v9 = vsel %vm42_vm1, %v303_v33, %v301_v32  ;;  %v121_v58 = vsub.f32 %v330_v51, %v117_v42  ;;  %v130_v33 = vmul.f32 %v126_v57, %v46_v49 }
  0x87   :  { %v97_v44 = vmul.f32 %v93_v7, %v87_v62  ;;  %v129_v59 = vmul.f32 %v125_v61, %v43_v9  ;;  %v102_v13 = vmul.f32 %v98_v22, %v88_v12 }
  0x88   :  { %v132_v5 = vsub.f32 %v120_v37, %v128_v30 }
  0x89   :  { %v101_v11 = vmul.f32 %v97_v44, %v87_v62 }
  0x8b   :  { %v165_v62 = vmul.f32 %v161_v6, %v101_v11 }
  0x8c   :  { %v52_v63 = vpop.permute.xlu1 %51  ;;  %v50_v2 = vpop.permute.xlu0 %49 }
  0x8d   :  { %v58_v29 = vsel %vm55_vm2, %v48_v20, %v50_v2  ;;  %v139_v20 = vmul.f32 %v135_v56, %v59_v27  ;;  %v122_v56 = vsub.f32 %v326_v48, %v118_v15  ;;  %v56_v4 = vsel %vm55_vm2, %v52_v63, %v54_v55 }
  0x8e   :  { %v140_v38 = vmul.f32 %v136_v10, %v58_v29  ;;  %v57_v32 = vsel %vm55_vm2, %v50_v2, %v52_v63  ;;  %v142_v17 = vmul.f32 %v138_v0, %v56_v4  ;;  %v133_v27 = vsub.f32 %v121_v58, %v129_v59 }
  0x8f   :  { %v143_v45 = vsub.f32 %v131_v25, %v139_v20  ;;  %v141_v48 = vmul.f32 %v137_v28, %v57_v32  ;;  %v134_v18 = vsub.f32 %v122_v56, %v130_v33  ;;  %v166_v63 = vmul.f32 %v162_v14, %v102_v13 }
  0x90   :  { %v144_v52 = vsub.f32 %v132_v5, %v140_v38 }
  0x91   :  { %v146_v2 = vsub.f32 %v134_v18, %v142_v17  ;;  %v145_v12 = vsub.f32 %v133_v27, %v141_v48 }
  0x94   :  { %v63_v16 = vpop.permute.xlu1 %62  ;;  %v61_v46 = vpop.permute.xlu0 %60 }
  0x95   :  { %v70_v8 = vsel %vm68_vm3, %v63_v16, %v65_v39  ;;  %v71_v41 = vsel %vm68_vm3, %v61_v46, %v63_v16 }
  0x96   :  { %v152_v53 = vmul.f32 %v148_v3, %v70_v8  ;;  %v151_v54 = vmul.f32 %v147_v35, %v71_v41 }
  0x98   :  { %v156_v60 = vsub.f32 %v144_v52, %v152_v53  ;;  %v155_v10 = vsub.f32 %v143_v45, %v151_v54 }
  0x9a   :  { %v168_v1 = vadd.f32 %v164_v34, %v156_v60  ;;  %v167_v51 = vadd.f32 %v163_v36, %v155_v10 }
  0x9c   :  { %v176_v55 = vadd.f32 %v172_v40, %v168_v1  ;;  %v175_v29 = vadd.f32 %v171_v43, %v167_v51  ;;  %v67_v3 = vpop.permute.xlu0 %66 }
  0x9d   :  { %v69_v57 = vsel %vm68_vm3, %v65_v39, %v67_v3  ;;  %v72_v61 = vsel %vm68_vm3, %v67_v3, %v61_v46 }
  0x9e   :  { %180 = vst [vmem:[%s412_s2 + $0x8] sm:$0xff] %v176_v55  ;;  %v153_v0 = vmul.f32 %v149_v47, %v69_v57  ;;  %v154_v28 = vmul.f32 %v150_v50, %v72_v61 }
  0x9f   :  { %179 = vst [vmem:[%s412_s2] sm:$0xff] %v175_v29 }
  0xa0   :  { %v157_v7 = vsub.f32 %v145_v12, %v153_v0  ;;  %v158_v23 = vsub.f32 %v146_v2, %v154_v28 }
  0xa2   :  { %v169_v30 = vadd.f32 %v165_v62, %v157_v7  ;;  %v170_v31 = vadd.f32 %v166_v63, %v158_v23 }
  0xa4   :  { %v177_v20 = vadd.f32 %v173_v24, %v169_v30  ;;  %v178_v34 = vadd.f32 %v174_v19, %v170_v31 }
  0xa6   :  { %181 = vst [vmem:[%s412_s2 + $0x10] sm:$0xff] %v177_v20 }
  0xa7   :  { %182 = vst [vmem:[%s412_s2 + $0x18] sm:$0xff] %v178_v34 }

</bundles_post_ra>
